<compile_context>
chip_gen: v7x
topology: tpu7x:2x2x1
jax: 0.10.0
libtpu: 0.0.40
codegen_flags: <defaults>
</compile_context>

<pallas_src>
import math

import jax
import jax.numpy as jnp
from jax.experimental import pallas as pl
from jax.experimental.pallas import tpu as pltpu


def _vmem_capacity_bytes():
    try:
        return int(pltpu.get_tpu_info().vmem_capacity_bytes)
    except Exception:
        return 64 * 1024 * 1024  # conservative default (v7x per-TensorCore VMEM)


def _round_up(v, m):
    return -(-v // m) * m


def _maybe_split_m(rows, tm, other_parallel_blocks):
    """Prefer >=2 blocks along the parallel M axis (v7x has 2 TensorCores)."""
    if other_parallel_blocks == 1 and pl.cdiv(rows, tm) == 1 and rows >= 16:
        half = _round_up(-(-rows // 2), 8)
        if half < rows:
            return half
    return tm


# --------------------------------------------------------------------------
# Kernels
# --------------------------------------------------------------------------
def _glu_resident_kernel(x_ref, wa_ref, wg_ref, ba_ref, bg_ref, out_ref, gate_ref):
    # Weights fully resident in VMEM; single pass over M. Weight layout is
    # (hidden, in_features) -> contract last dims (no transpose anywhere).
    dims = (((1,), (1,)), ((), ()))
    x = x_ref[...]
    act = jax.lax.dot_general(x, wa_ref[...], dims,
                              preferred_element_type=jnp.float32) + ba_ref[...]
    pre = jax.lax.dot_general(x, wg_ref[...], dims,
                              preferred_element_type=jnp.float32) + bg_ref[...]
    gate = jax.nn.sigmoid(pre)
    out_ref[...] = (act * gate).astype(out_ref.dtype)
    gate_ref[...] = gate.astype(gate_ref.dtype)


def _make_tiled_kernel(tk, k_rem):
    def kernel(x_ref, wa_ref, wg_ref, ba_ref, bg_ref, out_ref, gate_ref,
               acc_a, acc_g):
        k = pl.program_id(2)
        nk = pl.num_programs(2)

        @pl.when(k == 0)
        def _():
            # Fold the bias adds into the accumulator init (frees the epilogue).
            acc_a[...] = jnp.broadcast_to(ba_ref[...], acc_a.shape)
            acc_g[...] = jnp.broadcast_to(bg_ref[...], acc_g.shape)

        x = x_ref[...]
        wa = wa_ref[...]
        wg = wg_ref[...]
        if k_rem:
            # K % tk != 0: zero the out-of-range tail columns of the last
            # reduction block so padded garbage never reaches the MXU.
            valid = jnp.where(k == nk - 1, k_rem, tk)
            col_x = jax.lax.broadcasted_iota(jnp.int32, x.shape, 1)
            col_w = jax.lax.broadcasted_iota(jnp.int32, wa.shape, 1)
            x = jnp.where(col_x < valid, x, 0)
            wa = jnp.where(col_w < valid, wa, 0)
            wg = jnp.where(col_w < valid, wg, 0)

        dims = (((1,), (1,)), ((), ()))
        acc_a[...] += jax.lax.dot_general(x, wa, dims,
                                          preferred_element_type=jnp.float32)
        acc_g[...] += jax.lax.dot_general(x, wg, dims,
                                          preferred_element_type=jnp.float32)

        @pl.when(k == nk - 1)
        def _():
            gate = jax.nn.sigmoid(acc_g[...])
            out_ref[...] = (acc_a[...] * gate).astype(out_ref.dtype)
            gate_ref[...] = gate.astype(gate_ref.dtype)

    return kernel


# --------------------------------------------------------------------------
# Wrapper
# --------------------------------------------------------------------------
def glu(x, wa, ba, wg, bg, *, out_dtype=None, gate_dtype=None,
        compute_dtype=None, force_path=None):
    """Fused GLU forward: returns (activation * gate, gate).

    wa / wg are PyTorch-style nn.Linear weights of shape (hidden, in_features)
    (consumed untransposed); ba / bg are (hidden,) biases.
    compute_dtype: optional matmul input dtype (e.g. jnp.bfloat16); the MXU
    accumulation, bias add, sigmoid and gating stay float32.
    force_path: None | "resident" | "tiled" (testing hook).
    """
    orig_shape = x.shape
    in_features = orig_shape[-1]
    hidden = wa.shape[0]
    assert wa.shape == (hidden, in_features)
    assert wg.shape == (hidden, in_features)
    assert ba.shape == (hidden,)
    assert bg.shape == (hidden,)

    out_dtype = out_dtype or x.dtype
    gate_dtype = gate_dtype or out_dtype
    compute_dtype = compute_dtype or x.dtype

    rows = int(math.prod(orig_shape[:-1])) if orig_shape[:-1] else 1

    xf = x.reshape(rows, in_features).astype(compute_dtype)
    wa_c = wa.astype(compute_dtype)            # (hidden, in) -- no transpose
    wg_c = wg.astype(compute_dtype)
    ba_f = ba.reshape(1, hidden).astype(jnp.float32)
    bg_f = bg.reshape(1, hidden).astype(jnp.float32)

    xb = jnp.dtype(compute_dtype).itemsize
    ob = jnp.dtype(out_dtype).itemsize
    gb = jnp.dtype(gate_dtype).itemsize

    vmem_cap = _vmem_capacity_bytes()
    vmem_limit = (3 * vmem_cap) // 4           # ~48 MiB on v7x, ~96 MiB on v5e/v6e
    budget = (3 * vmem_limit) // 5             # tile working-set budget

    # Count weights twice: Pallas may still allocate double buffers even with
    # a constant index_map.
    resident_w_bytes = 2 * (2 * hidden * in_features * xb)
    use_resident = resident_w_bytes <= min(16 * 1024 * 1024, budget // 2)
    if force_path == "resident":
        use_resident = True
    elif force_path == "tiled":
        use_resident = False

    tm_candidates = (1024, 512, 256, 128, 64, 32, 16, 8)
    out_shapes = (jax.ShapeDtypeStruct((rows, hidden), out_dtype),
                  jax.ShapeDtypeStruct((rows, hidden), gate_dtype))

    if use_resident:
        tm = None
        for cand in tm_candidates:
            if cand > rows:
                continue
            need = (2 * cand * in_features * xb          # x (double-buffered)
                    + 2 * cand * hidden * (ob + gb)      # outputs (double-buffered)
                    + resident_w_bytes)
            if need <= budget:
                tm = cand
                break
        if tm is None:
            tm = rows if rows < 8 else 8
        tm = _maybe_split_m(rows, tm, 1)
        grid = (pl.cdiv(rows, tm),)

        out, gate = pl.pallas_call(
            _glu_resident_kernel,
            out_shape=out_shapes,
            grid_spec=pltpu.PrefetchScalarGridSpec(
                num_scalar_prefetch=0,
                grid=grid,
                in_specs=[
                    pl.BlockSpec((tm, in_features), lambda i: (i, 0)),
                    pl.BlockSpec((hidden, in_features), lambda i: (0, 0)),
                    pl.BlockSpec((hidden, in_features), lambda i: (0, 0)),
                    pl.BlockSpec((1, hidden), lambda i: (0, 0)),
                    pl.BlockSpec((1, hidden), lambda i: (0, 0)),
                ],
                out_specs=[
                    pl.BlockSpec((tm, hidden), lambda i: (i, 0)),
                    pl.BlockSpec((tm, hidden), lambda i: (i, 0)),
                ],
            ),
            compiler_params=pltpu.CompilerParams(
                dimension_semantics=("parallel",),
                vmem_limit_bytes=vmem_limit,
            ),
        )(xf, wa_c, wg_c, ba_f, bg_f)
    else:
        tn = hidden if hidden <= 1024 else 512          # multiple of 256 (MXU-friendly)
        tk = in_features if in_features <= 512 else 512  # bounded; tail masked in-kernel
        k_rem = in_features % tk

        tm = None
        for cand in tm_candidates:
            if cand > rows:
                continue
            need = (2 * cand * tk * xb                   # x (double-buffered)
                    + 2 * 2 * tn * tk * xb               # two weight streams
                    + 2 * cand * tn * (ob + gb)          # two outputs
                    + 2 * cand * tn * 4)                 # two f32 accumulators
            if need <= budget:
                tm = cand
                break
        if tm is None:
            tm = rows if rows < 8 else 8
        n_blocks = pl.cdiv(hidden, tn)
        tm = _maybe_split_m(rows, tm, n_blocks)
        grid = (pl.cdiv(rows, tm), n_blocks, pl.cdiv(in_features, tk))

        out, gate = pl.pallas_call(
            _make_tiled_kernel(tk, k_rem),
            out_shape=out_shapes,
            grid_spec=pltpu.PrefetchScalarGridSpec(
                num_scalar_prefetch=0,
                grid=grid,
                in_specs=[
                    pl.BlockSpec((tm, tk), lambda i, j, k: (i, k)),
                    pl.BlockSpec((tn, tk), lambda i, j, k: (j, k)),
                    pl.BlockSpec((tn, tk), lambda i, j, k: (j, k)),
                    pl.BlockSpec((1, tn), lambda i, j, k: (0, j)),
                    pl.BlockSpec((1, tn), lambda i, j, k: (0, j)),
                ],
                out_specs=[
                    pl.BlockSpec((tm, tn), lambda i, j, k: (i, j)),
                    pl.BlockSpec((tm, tn), lambda i, j, k: (i, j)),
                ],
                scratch_shapes=[
                    pltpu.VMEM((tm, tn), jnp.float32),
                    pltpu.VMEM((tm, tn), jnp.float32),
                ],
            ),
            compiler_params=pltpu.CompilerParams(
                dimension_semantics=("parallel", "parallel", "arbitrary"),
                vmem_limit_bytes=vmem_limit,
            ),
        )(xf, wa_c, wg_c, ba_f, bg_f)

    new_shape = orig_shape[:-1] + (hidden,)
    return out.reshape(new_shape), gate.reshape(new_shape)


def _glu_ref(x, wa, ba, wg, bg):
    act = jnp.einsum("...i,hi->...h", x, wa,
                     precision=jax.lax.Precision.HIGHEST) + ba
    pre = jnp.einsum("...i,hi->...h", x, wg,
                     precision=jax.lax.Precision.HIGHEST) + bg
    gate = jax.nn.sigmoid(pre)
    return act * gate, gate


if __name__ == "__main__":
    # ---- Test 1: module-typical small shapes, f32, resident path ----------
    batch, seq, input_size, hidden = 2, 8, 32, 32
    key = jax.random.PRNGKey(0)
    kx, kwa, kba, kwg, kbg = jax.random.split(key, 5)
    x = jax.random.normal(kx, (batch, seq, input_size), dtype=jnp.float32)
    scale = 1.0 / (input_size ** 0.5)
    wa = scale * jax.random.normal(kwa, (hidden, input_size), dtype=jnp.float32)
    ba = scale * jax.random.normal(kba, (hidden,), dtype=jnp.float32)
    wg = scale * jax.random.normal(kwg, (hidden, input_size), dtype=jnp.float32)
    bg = scale * jax.random.normal(kbg, (hidden,), dtype=jnp.float32)

    out, gate = glu(x, wa, ba, wg, bg)
    out = jax.block_until_ready(out)
    gate = jax.block_until_ready(gate)
    ref_out, ref_gate = _glu_ref(x, wa, ba, wg, bg)
    assert out.shape == (batch, seq, hidden)
    assert gate.shape == (batch, seq, hidden)
    assert jnp.allclose(out, ref_out, atol=1e-4, rtol=1e-4)
    assert jnp.allclose(gate, ref_gate, atol=1e-4, rtol=1e-4)

    # ---- Test 2: bf16 compute path (f32 accumulation + f32 epilogue) ------
    out_bf, gate_bf = glu(x, wa, ba, wg, bg, compute_dtype=jnp.bfloat16)
    out_bf = jax.block_until_ready(out_bf)
    bf = lambda a: a.astype(jnp.bfloat16).astype(jnp.float32)
    ref_out_bf, ref_gate_bf = _glu_ref(bf(x), bf(wa), ba, bf(wg), bg)
    assert jnp.allclose(out_bf, ref_out_bf, atol=1e-3, rtol=1e-3)
    assert jnp.allclose(gate_bf, ref_gate_bf, atol=1e-3, rtol=1e-3)

    # ---- Test 3: forced tiled path with non-128-multiple K (tail masking) -
    b2, s2, k2, h2 = 16, 8, 520, 128
    k2x, k2wa, k2ba, k2wg, k2bg = jax.random.split(jax.random.PRNGKey(1), 5)
    x2 = jax.random.normal(k2x, (b2, s2, k2), dtype=jnp.float32)
    sc2 = 1.0 / (k2 ** 0.5)
    wa2 = sc2 * jax.random.normal(k2wa, (h2, k2), dtype=jnp.float32)
    ba2 = sc2 * jax.random.normal(k2ba, (h2,), dtype=jnp.float32)
    wg2 = sc2 * jax.random.normal(k2wg, (h2, k2), dtype=jnp.float32)
    bg2 = sc2 * jax.random.normal(k2bg, (h2,), dtype=jnp.float32)

    out2, gate2 = glu(x2, wa2, ba2, wg2, bg2, force_path="tiled")
    out2 = jax.block_until_ready(out2)
    ref_out2, ref_gate2 = _glu_ref(x2, wa2, ba2, wg2, bg2)
    assert jnp.allclose(out2, ref_out2, atol=2e-3, rtol=2e-3)
    assert jnp.allclose(gate2, ref_gate2, atol=2e-3, rtol=2e-3)

    print("KERNEL_OK")
</pallas_src>

<mosaic_0001>
module attributes {stable_mosaic.version = 11 : i64} {
  func.func @_glu_resident_kernel(%arg0: i32, %arg1: memref<8x32xf32, #tpu.memory_space<vmem>>, %arg2: memref<32x32xf32, #tpu.memory_space<vmem>>, %arg3: memref<32x32xf32, #tpu.memory_space<vmem>>, %arg4: memref<1x32xf32, #tpu.memory_space<vmem>>, %arg5: memref<1x32xf32, #tpu.memory_space<vmem>>, %arg6: memref<8x32xf32, #tpu.memory_space<vmem>>, %arg7: memref<8x32xf32, #tpu.memory_space<vmem>>) attributes {dimension_semantics = [#tpu.dimension_semantics<parallel>], iteration_bounds = array<i64: 2>, scalar_prefetch = 0 : i64, scratch_operands = 0 : i64, tpu.core_type = #tpu.core_type<tc>, window_params = [{transform_indices = @transform_0, window_bounds = array<i64: 8, 32>}, {pipeline_mode = #tpu.pipeline_mode<synchronous>, transform_indices = @transform_1, window_bounds = array<i64: 32, 32>}, {pipeline_mode = #tpu.pipeline_mode<synchronous>, transform_indices = @transform_2, window_bounds = array<i64: 32, 32>}, {pipeline_mode = #tpu.pipeline_mode<synchronous>, transform_indices = @transform_3, window_bounds = array<i64: 1, 32>}, {pipeline_mode = #tpu.pipeline_mode<synchronous>, transform_indices = @transform_4, window_bounds = array<i64: 1, 32>}, {transform_indices = @transform_5, window_bounds = array<i64: 8, 32>}, {transform_indices = @transform_6, window_bounds = array<i64: 8, 32>}]} {
    %c0 = arith.constant 0 : index
    %c0_0 = arith.constant 0 : index
    %0 = vector.load %arg1[%c0, %c0_0] : memref<8x32xf32, #tpu.memory_space<vmem>>, vector<8x32xf32>
    %c0_1 = arith.constant 0 : index
    %c0_2 = arith.constant 0 : index
    %1 = vector.load %arg2[%c0_1, %c0_2] : memref<32x32xf32, #tpu.memory_space<vmem>>, vector<32x32xf32>
    %cst = arith.constant dense<0.000000e+00> : vector<8x32xf32>
    %2 = tpu.matmul %0, %1, %cst {dimension_numbers = #tpu.dot_dimension_numbers<[1], [1], [0], [0], [0, 0, 1, 0], [], []>} : vector<8x32xf32>, vector<32x32xf32>, vector<8x32xf32> -> vector<8x32xf32>
    %c0_3 = arith.constant 0 : index
    %c0_4 = arith.constant 0 : index
    %3 = vector.load %arg4[%c0_3, %c0_4] : memref<1x32xf32, #tpu.memory_space<vmem>>, vector<1x32xf32>
    %4 = vector.broadcast %3 : vector<1x32xf32> to vector<8x32xf32>
    %5 = arith.addf %2, %4 : vector<8x32xf32>
    %c0_5 = arith.constant 0 : index
    %c0_6 = arith.constant 0 : index
    %6 = vector.load %arg3[%c0_5, %c0_6] : memref<32x32xf32, #tpu.memory_space<vmem>>, vector<32x32xf32>
    %cst_7 = arith.constant dense<0.000000e+00> : vector<8x32xf32>
    %7 = tpu.matmul %0, %6, %cst_7 {dimension_numbers = #tpu.dot_dimension_numbers<[1], [1], [0], [0], [0, 0, 1, 0], [], []>} : vector<8x32xf32>, vector<32x32xf32>, vector<8x32xf32> -> vector<8x32xf32>
    %c0_8 = arith.constant 0 : index
    %c0_9 = arith.constant 0 : index
    %8 = vector.load %arg5[%c0_8, %c0_9] : memref<1x32xf32, #tpu.memory_space<vmem>>, vector<1x32xf32>
    %9 = vector.broadcast %8 : vector<1x32xf32> to vector<8x32xf32>
    %10 = arith.addf %7, %9 : vector<8x32xf32>
    %11 = arith.negf %10 : vector<8x32xf32>
    %12 = math.exp %11 : vector<8x32xf32>
    %cst_10 = arith.constant 1.000000e+00 : f32
    %13 = vector.broadcast %cst_10 : f32 to vector<8x32xf32>
    %14 = arith.addf %13, %12 : vector<8x32xf32>
    %15 = arith.divf %13, %14 : vector<8x32xf32>
    %16 = arith.mulf %5, %15 : vector<8x32xf32>
    %c0_11 = arith.constant 0 : index
    %c0_12 = arith.constant 0 : index
    %17 = vector.load %arg6[%c0_11, %c0_12] : memref<8x32xf32, #tpu.memory_space<vmem>>, vector<8x32xf32>
    tpu.vector_store %arg6[%c0_11, %c0_12], %16 {strides = array<i32>} : memref<8x32xf32, #tpu.memory_space<vmem>>, vector<8x32xf32>,
    %c0_13 = arith.constant 0 : index
    %c0_14 = arith.constant 0 : index
    %18 = vector.load %arg7[%c0_13, %c0_14] : memref<8x32xf32, #tpu.memory_space<vmem>>, vector<8x32xf32>
    tpu.vector_store %arg7[%c0_13, %c0_14], %15 {strides = array<i32>} : memref<8x32xf32, #tpu.memory_space<vmem>>, vector<8x32xf32>,
    return
  }
  func.func @transform_0(%arg0: i32) -> (i32, i32) {
    %c0_i32 = arith.constant 0 : i32
    %c0_i32_0 = arith.constant 0 : i32
    return %arg0, %c0_i32 : i32, i32
  }
  func.func @transform_1(%arg0: i32) -> (i32, i32) {
    %c0_i32 = arith.constant 0 : i32
    %c0_i32_0 = arith.constant 0 : i32
    %c0_i32_1 = arith.constant 0 : i32
    return %c0_i32, %c0_i32_0 : i32, i32
  }
  func.func @transform_2(%arg0: i32) -> (i32, i32) {
    %c0_i32 = arith.constant 0 : i32
    %c0_i32_0 = arith.constant 0 : i32
    %c0_i32_1 = arith.constant 0 : i32
    return %c0_i32, %c0_i32_0 : i32, i32
  }
  func.func @transform_3(%arg0: i32) -> (i32, i32) {
    %c0_i32 = arith.constant 0 : i32
    %c0_i32_0 = arith.constant 0 : i32
    %c0_i32_1 = arith.constant 0 : i32
    return %c0_i32, %c0_i32_0 : i32, i32
  }
  func.func @transform_4(%arg0: i32) -> (i32, i32) {
    %c0_i32 = arith.constant 0 : i32
    %c0_i32_0 = arith.constant 0 : i32
    %c0_i32_1 = arith.constant 0 : i32
    return %c0_i32, %c0_i32_0 : i32, i32
  }
  func.func @transform_5(%arg0: i32) -> (i32, i32) {
    %c0_i32 = arith.constant 0 : i32
    %c0_i32_0 = arith.constant 0 : i32
    return %arg0, %c0_i32 : i32, i32
  }
  func.func @transform_6(%arg0: i32) -> (i32, i32) {
    %c0_i32 = arith.constant 0 : i32
    %c0_i32_0 = arith.constant 0 : i32
    return %arg0, %c0_i32 : i32, i32
  }
}

</mosaic_0001>

<bundles_post_ra>
// kernel: tpu_custom_call.1
= control target key start
LH: loop header
LB: loop body
LE: loop exit
PB: predicated region body
PF: predicated region fallthrough
CT: control target
= control target key end

     0   :  { %12 = vsyncpa [#allocation3], 0  ;;  %s1349_s0 = inlined_call_operand.hbm [shape: f32[16,32], index: 0, kind: input, shape index: {}]   ;;  %s1350_s1 = inlined_call_operand.hbm [shape: f32[32,32], index: 1, kind: input, shape index: {}]   ;;  %s1351_s2 = inlined_call_operand.hbm [shape: f32[32,32], index: 2, kind: input, shape index: {}]   ;;  %s1352_s3 = inlined_call_operand.vmem [shape: f32[1,32], index: 3, kind: input, shape index: {}]   ;;  %s1353_s4 = inlined_call_operand.vmem [shape: f32[1,32], index: 4, kind: input, shape index: {}]   ;;  %s1354_s5 = inlined_call_operand.hbm [shape: f32[16,32], index: 5, kind: output, shape index: {0}]   ;;  %s1355_s6 = inlined_call_operand.hbm [shape: f32[16,32], index: 6, kind: output, shape index: {1}]  }
   0x1   :  { %14 = vsyncpa [#allocation3 + $0x1], 0 }
   0x2   :  { %15 = vsyncpa [#allocation6], 0 }
   0x3   :  { %16 = vsyncpa [#allocation4], 0 }
   0x4   :  { %18 = vsyncpa [#allocation4 + $0x1], 0 }
   0x5   :  { %19 = vsyncpa [#allocation10], 0 }
   0x6   :  { %21 = vsyncpa [#allocation10 + $0x1], 0  ;;  %s1056_s21 = smov 0   ;;  %s1058_s22 = smov 0  }
   0x7   :  { %s1060_s23 = smov 0   ;;  %s1062_s24 = smov 0  }
   0x8 LB: > { %s1077_s25 = sadd.s32 4294967295, %s1009_s24   ;;  %s660_s26 = sadd.s32 4294967294, %s1009_s24   ;;  %s1009_s24 = sphi %s1062_s24, %s1377_s24   ;;  %s1005_s23 = sphi %s1060_s23, %s1376_s23   ;;  %s1001_s22 = sphi %s1058_s22, %s1375_s22   ;;  %s997_s21 = sphi %s1056_s21, %s1374_s21  }
   0x9   : > { %p47_p0 = scmp.ne.s32.totalorder %s1001_s22, %s997_s21  ;;  %p1356_p1 = scmp.eq.s32.totalorder %s1077_s25, 0 }
   0xa   : > { %p161_p3 = scmp.eq.s32.totalorder %s660_s26, 1  ;;  %p661_p5 = scmp.ge.s32.totalorder %s1009_s24, 1 }
   0xb   : > { %p1086_p4 = por %p1356_p1, %p47_p0  ;;  %p194_p7 = scmp.lt.s32.totalorder %s1009_s24, 3 }
   0xc   : > { %p1091_p6 = por %p161_p3, %p47_p0  ;;  %s1011_s30 = smov [#allocation5]  }
   0xd   : > { %s1359_s27 = scalar_select %p1086_p4, 1, 0 }
   0xe   : > { %s1360_s28 = scalar_select %p1091_p6, 1, 0 }
   0xf   : > { %p1096_p8 = pnand %p661_p5, %p194_p7  ;;  %s206_s7 = sshll.u32 %s1011_s30, 4  ;;  %s1100_s7 = int_to_ptr.vmem [resolvable:$true] %s206_s7 }
  0x10   : > { %s1012_s9 = smov [#allocation7]   ;;  %s821_s13 = scalar_lea.hbm %s1350_s1, 512 }
  0x11   : > { %p754_p9 = pneg %p1096_p8  ;;  %s219_s10 = sshll.u32 %s1012_s9, 4  ;;  %s1111_s10 = int_to_ptr.vmem [resolvable:$true] %s219_s10 }
  0x12   : > { %p822_p12 = scmp.ne.s32.totalorder %s1350_s1, %s821_s13  ;;  %p828_p5 = scmp.lt.u32.totalorder %s821_s13, %s1350_s1 }
  0x13   : > { %p1107_p11 = pnand %p754_p9, %p1356_p1 }
  0x15   : > { %p823_p13 = pneg %p1107_p11 }
  0x17   : > { %p824_p0 = pnand %p823_p13, %p822_p12 }
  0x19   : > { %p825_p3 = pneg %p824_p0 }
  0x1b   : > { %p830_p7 = pnand %p828_p5, %p825_p3 }
  0x1d   : > { %833 = shalt.err (!%p830_p7)
}
  0x1e   : > { %s834_s18 = scalar_lea.vmem %s1100_s7, 512  ;;  %p842_p2 = scmp.lt.s32.totalorder %s1100_s7, %s1100_s7 }
  0x1f   : > { %p835_p9 = scmp.ne.s32.totalorder %s1100_s7, %s834_s18  ;;  %p843_p12 = scmp.lt.s32.totalorder %s834_s18, %s834_s18 }
  0x21   : > { %p837_p10 = pnand %p835_p9, %p823_p13  ;;  %p844_p0 = por %p843_p12, %p842_p2 }
  0x23   : > { %p838_p1 = pneg %p837_p10 }
  0x25   : > { %p845_p6 = pnand %p844_p0, %p838_p1 }
  0x27   : > { %848 = shalt.err (!%p845_p6)
}
  0x28   : > { %s1013_s19 = smov 128   ;;  %s1014_s20 = smov 8  }
  0x29   : > { %757 = dma.hbm_to_vmem [thread:$0]  (!%p1107_p11), %s1350_s1, 512, %s1100_s7, [#allocation6], %s1013_s19, %s1013_s19, %s1014_s20  }
  0x2a   : > { %s849_s12 = scalar_lea.hbm %s1351_s2, 512 }
  0x2b   : > { %p850_p2 = scmp.ne.s32.totalorder %s1351_s2, %s849_s12  ;;  %p856_p10 = scmp.lt.u32.totalorder %s849_s12, %s1351_s2 }
  0x2d   : > { %p852_p1 = pnand %p850_p2, %p823_p13 }
  0x2f   : > { %p853_p6 = pneg %p852_p1 }
  0x31   : > { %p858_p3 = pnand %p856_p10, %p853_p6 }
  0x33   : > { %861 = shalt.err (!%p858_p3)
}
  0x34   : > { %s862_s7 = scalar_lea.vmem %s1111_s10, 512  ;;  %p870_p12 = scmp.lt.s32.totalorder %s1111_s10, %s1111_s10 }
  0x35   : > { %p863_p5 = scmp.ne.s32.totalorder %s1111_s10, %s862_s7  ;;  %p871_p0 = scmp.lt.s32.totalorder %s862_s7, %s862_s7 }
  0x37   : > { %p865_p7 = pnand %p863_p5, %p823_p13  ;;  %p872_p2 = por %p871_p0, %p870_p12 }
  0x39   : > { %p866_p9 = pneg %p865_p7 }
  0x3b   : > { %p873_p1 = pnand %p872_p2, %p866_p9 }
  0x3d   : > { %876 = shalt.err (!%p873_p1)
}
  0x3e   : > { %760 = dma.hbm_to_vmem [thread:$0]  (!%p1107_p11), %s1351_s2, 512, %s1111_s10, [#allocation6], %s1013_s19, %s1013_s19, %s1014_s20  }
  0x3f   : > { %s1166_s26 = sadd.s32 1, %s1009_s24   ;;  %s34_s8 = sadd.s32 1, %s1005_s23 }
  0x40   : > { %s31_s30 = ssub.s32 %s1009_s24, %s1166_s26  ;;  %p41_p13 = scmp.ne.s32.totalorder %s1005_s23, %s1001_s22 }
  0x41   : > { %p32_p6 = scmp.eq.s32.totalorder %s31_s30, 0  ;;  %p42_p10 = scmp.eq.s32.totalorder %s1009_s24, 0 }
  0x42   : > { %p1363_p3 = scmp.eq.s32.totalorder %s1077_s25, 1  ;;  %p774_p7 = scmp.lt.s32.totalorder %s1009_s24, 2 }
  0x43   : > { %s1182_s11 = scalar_select %p32_p6, %s1005_s23, %s34_s8  }
  0x44   : > { %p1176_p5 = por %p1363_p3, %p41_p13  ;;  %p43_p9 = por %p42_p10, %p41_p13 }
  0x45   : > { %s239_s12 = sand.u32 1, %s1005_s23   ;;  %s666_s10 = sshll.u32 %s1009_s24, 7 }
  0x46   : > { %s1364_s9 = scalar_select %p1176_p5, 1, 0 }
  0x47   : > { %s665_s13 = sshll.u32 %s239_s12, 3  ;;  %s1189_s14 = scalar_lea.hbm %s1349_s0, %s666_s10 }
  0x48   : > { %s243_s15 = scalar_lea.vmem [#allocation2], %s665_s13  ;;  %p1193_p11 = pnand %p774_p7, %p43_p9 }
  0x49   : > { %s250_s16 = sshll.u32 %s243_s15, 4  ;;  %s240_s17 = scalar_lea.sflag [#allocation3], %s239_s12  ;;  %s1191_s16 = int_to_ptr.vmem [resolvable:$true] %s250_s16 }
  0x4a   : > { %s877_s18 = scalar_lea.hbm %s1189_s14, 128  ;;  %p879_p0 = pneg %p1193_p11 }
  0x4b   : > { %p878_p12 = scmp.ne.s32.totalorder %s1189_s14, %s877_s18  ;;  %s882_s13 = scalar_lea.hbm %s1349_s0, 256 }
  0x4c   : > { %p883_p13 = scmp.lt.u32.totalorder %s1189_s14, %s1349_s0  ;;  %p884_p6 = scmp.lt.u32.totalorder %s882_s13, %s877_s18 }
  0x4d   : > { %p880_p2 = pnand %p879_p0, %p878_p12  ;;  %p886_p3 = scmp.lt.u32.totalorder %s877_s18, %s1189_s14 }
  0x4e   : > { %p885_p10 = por %p884_p6, %p883_p13 }
  0x4f   : > { %p881_p1 = pneg %p880_p2 }
  0x50   : > { %p887_p7 = por %p886_p3, %p885_p10 }
  0x52   : > { %p888_p9 = pnand %p887_p7, %p881_p1 }
  0x54   : > { %891 = shalt.err (!%p888_p9)
}
  0x55   : > { %s892_s12 = scalar_lea.vmem %s1191_s16, 128  ;;  %s1015_s20 = smov [#allocation2]  }
  0x56   : > { %p893_p12 = scmp.ne.s32.totalorder %s1191_s16, %s892_s12  ;;  %s897_s15 = sshll.u32 %s1015_s20, 4  ;;  %s898_s15 = int_to_ptr.vmem [resolvable:$false] %s897_s15 }
  0x57   : > { %s899_s8 = scalar_lea.vmem %s898_s15, 256  ;;  %p900_p4 = scmp.lt.s32.totalorder %s1191_s16, %s898_s15 }
  0x58   : > { %p895_p2 = pnand %p893_p12, %p879_p0  ;;  %p901_p13 = scmp.lt.s32.totalorder %s899_s8, %s892_s12 }
  0x5a   : > { %p896_p5 = pneg %p895_p2  ;;  %p902_p6 = por %p901_p13, %p900_p4 }
  0x5c   : > { %p903_p10 = pnand %p902_p6, %p896_p5 }
  0x5e   : > { %906 = shalt.err (!%p903_p10)
}
  0x5f   : > { %764 = dma.hbm_to_vmem [thread:$0]  (!%p1193_p11), %s1189_s14, 128, %s1191_s16, %s240_s17  }
  0x60   : > { %259 = sbr.rel (%p1096_p8) target bundleno = 402 (0x192), region = 40  ;;  %s1225_s18 = sand.u32 (!%p1096_p8), 1, %s1001_s22  }
  0x61   : > { %s1228_s30 = sshll.u32 (!%p1096_p8), %s1225_s18, 3  ;;  %s262_s13 = scalar_lea.sflag (!%p1096_p8), [#allocation3], %s1225_s18 }
  0x62   : > { %s265_s10 = scalar_lea.vmem (!%p1096_p8), [#allocation2], %s1228_s30  ;;  %p1366_p4 = scmp.ne.s32.totalorder (!%p1096_p8), %s1359_s27, 0 }
  0x67   : > { %980 = dma.done.wait (%p1366_p4), %s262_s13, 128  }
  0x68   : > { %982 = vsyncadd (%p1366_p4), %s262_s13, 4294967168  ;;  %p1367_p5 = scmp.eq.s32.totalorder %s1077_s25, 0 }
  0x6a   : > { %984 = dma.done.wait (%p1367_p5), [#allocation6], 1024   ;;  %p1368_p8 = pmov %p1367_p5 }
  0x6b   : > { %v1016_v0 = vmov 0.0|0.0   ;;  %vm1017_vm0 = vmmov 0   ;;  %v1018_v1 = vmov 0.0   ;;  %vm319_vm1 = vcmask 261120   ;;  %v405_v3 = vld [vmem:[#allocation7] sm:$0xff]  ;;  %v406_v4 = vld [vmem:[#allocation7 + $0x8] sm:$0xff] }
  0x6c   : > { %986 = vsyncadd (%p1368_p8), [#allocation6], 4294966272  ;;  %732 = vmatprep.subr.bf16.mxu1 %v1016_v0  ;;  %721 = vmatprep.mubr.msk.f32.mxu1 %vm1017_vm0, %v1018_v1  ;;  %v733_v5 = vpack.c.bf16 %v406_v4, %v405_v3  ;;  %v308_v6 = vld [vmem:[#allocation5] sm:$0xff]  ;;  %v309_v7 = vld [vmem:[#allocation5 + $0x8] sm:$0xff]  ;;  %s688_s7 = sshll.u32 %s1077_s25, 7  ;;  %s306_s17 = scalar_lea.vmem [#allocation9], %s1228_s30 }
  0x6d   : > { %724 = vmatprep.subr.bf16.mxu0 %v1016_v0  ;;  %710 = vmatprep.mubr.msk.f32.mxu0 %vm1017_vm0, %v1018_v1  ;;  %vm1242_vm2 = vmpackc.low %vm319_vm1, %vm319_vm1  ;;  %v725_v8 = vpack.c.bf16 %v309_v7, %v308_v6  ;;  %v407_v9 = vld [vmem:[#allocation7 + $0x10] sm:$0xff]  ;;  %v408_v10 = vld [vmem:[#allocation7 + $0x18] sm:$0xff]  ;;  %s539_s19 = sshll.u32 %s306_s17, 4  ;;  %s299_s12 = scalar_lea.vmem [#allocation8], %s1228_s30  ;;  %s1274_s19 = int_to_ptr.vmem [resolvable:$true] %s539_s19 }
  0x6e   : > { %735 = vmatpush3.bf16.xpose.msk.msra.mxu1 %vm1242_vm2, %v733_v5  ;;  %v310_v11 = vld [vmem:[#allocation5 + $0x10] sm:$0xff]  ;;  %v311_v12 = vld [vmem:[#allocation5 + $0x18] sm:$0xff]  ;;  %v737_v13 = vpack.c.bf16 %v408_v10, %v407_v9  ;;  %s526_s20 = sshll.u32 %s299_s12, 4  ;;  %s1272_s13 = scalar_lea.hbm %s1355_s6, %s688_s7  ;;  %s1281_s20 = int_to_ptr.vmem [resolvable:$true] %s526_s20 }
  0x6f   : > { %736 = vmatprep.subr.bf16.mxu1 %v1016_v0  ;;  %727 = vmatpush3.bf16.xpose.msk.msra.mxu0 %vm1242_vm2, %v725_v8  ;;  %v729_v14 = vpack.c.bf16 %v311_v12, %v310_v11  ;;  %v307_v15 = vld [vmem:[%s265_s10] sm:$0xff]  ;;  %s1279_s27 = scalar_lea.hbm %s1354_s5, %s688_s7  ;;  %s513_s29 = scalar_lea.sflag [#allocation10], %s1225_s18 }
  0x70   : > { %728 = vmatprep.subr.bf16.mxu0 %v1016_v0  ;;  %v679_v16 = vld [vmem:[%s1353_s4] ss:$0 sm:$0xff]  ;;  %s907_s14 = scalar_lea.vmem %s1274_s19, 128  ;;  %p1371_p0 = scmp.ne.s32.totalorder %s1364_s9, 0 }
  0x71   : > { %v673_v25 = vld [vmem:[%s1352_s3] ss:$0 sm:$0xff]  ;;  %p908_p11 = scmp.ne.s32.totalorder %s1274_s19, %s907_s14  ;;  %s1019_s16 = smov [#allocation9]  }
  0x72   : > { %s911_s15 = sshll.u32 %s1019_s16, 4  ;;  %s912_s15 = int_to_ptr.vmem [resolvable:$false] %s911_s15 }
  0x73   : > { %p909_p1 = pnand %p908_p11, %p1371_p0  ;;  %s913_s8 = scalar_lea.vmem %s912_s15, 256 }
  0x74   : > { %p914_p7 = scmp.lt.s32.totalorder %s1274_s19, %s912_s15  ;;  %p915_p9 = scmp.lt.s32.totalorder %s913_s8, %s907_s14 }
  0x75   : > { %p910_p3 = pneg %p909_p1 }
  0x76   : > { %739 = vmatpush3.bf16.xpose.msk.msra.mxu1 %vm1242_vm2, %v737_v13  ;;  %p916_p12 = por %p915_p9, %p914_p7 }
  0x77   : > { %731 = vmatpush3.bf16.xpose.msk.msra.mxu0 %vm1242_vm2, %v729_v14 }
  0x78   : > { %p917_p2 = pnand %p916_p12, %p910_p3 }
  0x7d   : > { %722 = vmatmul.mubr.msk.f32.vlgmr.msra.gmra.mrb[0].mxu1 %vm319_vm1, %v307_v15 }
  0x7e   : > { %711 = vmatmul.mubr.msk.f32.vlgmr.msra.gmra.mrb[0].mxu0 %vm319_vm1, %v307_v15 }
 0x150   : > { %v494_v17 = vpop.f32.mrb[0].mxu1 }
 0x151   : > { %v495_v18 = vadd.f32 %v679_v16, %v494_v17  ;;  %v723_v19 = vpop.f32.mrb[1].mxu1  ;;  %v401_v20 = vpop.f32.mrb[0].mxu0 }
 0x152   : > { %v712_v22 = vpop.f32.mrb[1].mxu0  ;;  %v402_v26 = vadd.f32 %v673_v25, %v401_v20 }
 0x153   : > { %v685_v21 = vmul.f32 -1.442695, %v495_v18 }
 0x155   : > { %817 = vpow2.f32 %v685_v21 }
 0x15f   : > { %v818_v23 = vpop.eup %817 }
 0x160   : > { %v501_v24 = vadd.f32 1.0, %v818_v23 }
 0x162   : > { %819 = vrcp.f32 %v501_v24 }
 0x16c   : > { %v820_v27 = vpop.eup %819 }
 0x16d   : > { %v504_v28 = vmul.f32 %v820_v27, %v402_v26  ;;  %506 = vst.msk [vmem:[%s306_s17] sm:$0xff] %vm319_vm1, %v820_v27 }
 0x16e   : > { %920 = shalt.err (!%p917_p2)
}
 0x16f   : > { %s921_s7 = scalar_lea.hbm %s1272_s13, 128  ;;  %s925_s10 = scalar_lea.hbm %s1355_s6, 256 }
 0x170   : > { %p922_p13 = scmp.ne.s32.totalorder %s1272_s13, %s921_s7  ;;  %p926_p4 = scmp.lt.u32.totalorder %s1272_s13, %s1355_s6 }
 0x171   : > { %p927_p5 = scmp.lt.u32.totalorder %s925_s10, %s921_s7  ;;  %p929_p11 = scmp.lt.u32.totalorder %s921_s7, %s1272_s13 }
 0x172   : > { %p923_p6 = pnand %p922_p13, %p1371_p0 }
 0x173   : > { %p928_p8 = por %p927_p5, %p926_p4 }
 0x174   : > { %p924_p10 = pneg %p923_p6 }
 0x175   : > { %p930_p1 = por %p929_p11, %p928_p8 }
 0x177   : > { %p931_p3 = pnand %p930_p1, %p924_p10 }
 0x179   : > { %934 = shalt.err (!%p931_p3)
}
 0x17a   : > { %751 = dma.vmem_to_hbm [thread:$0]  (%p1371_p0), %s1274_s19, 128, %s1272_s13, %s513_s29   ;;  %505 = vst.msk [vmem:[%s299_s12] sm:$0xff] %vm319_vm1, %v504_v28 }
 0x17b   : > { %s508_s14 = scalar_lea.sflag [#allocation4], %s1225_s18  ;;  %s935_s8 = scalar_lea.vmem %s1281_s20, 128 }
 0x17c   : > { %p936_p7 = scmp.ne.s32.totalorder %s1281_s20, %s935_s8  ;;  %s1020_s7 = smov [#allocation8]  }
 0x17d   : > { %s939_s17 = sshll.u32 %s1020_s7, 4  ;;  %s940_s17 = int_to_ptr.vmem [resolvable:$false] %s939_s17 }
 0x17e   : > { %p937_p9 = pnand %p936_p7, %p1371_p0  ;;  %s941_s25 = scalar_lea.vmem %s940_s17, 256 }
 0x17f   : > { %p942_p2 = scmp.lt.s32.totalorder %s1281_s20, %s940_s17  ;;  %p943_p13 = scmp.lt.s32.totalorder %s941_s25, %s935_s8 }
 0x180   : > { %p938_p12 = pneg %p937_p9 }
 0x181   : > { %p944_p6 = por %p943_p13, %p942_p2 }
 0x183   : > { %p945_p10 = pnand %p944_p6, %p938_p12 }
 0x185   : > { %948 = shalt.err (!%p945_p10)
}
 0x186   : > { %s949_s18 = scalar_lea.hbm %s1279_s27, 128  ;;  %s953_s12 = scalar_lea.hbm %s1354_s5, 256 }
 0x187   : > { %p950_p4 = scmp.ne.s32.totalorder %s1279_s27, %s949_s18  ;;  %p954_p11 = scmp.lt.u32.totalorder %s1279_s27, %s1354_s5 }
 0x188   : > { %p955_p1 = scmp.lt.u32.totalorder %s953_s12, %s949_s18  ;;  %p957_p7 = scmp.lt.u32.totalorder %s949_s18, %s1279_s27 }
 0x189   : > { %p951_p5 = pnand %p950_p4, %p1371_p0 }
 0x18a   : > { %p956_p3 = por %p955_p1, %p954_p11 }
 0x18b   : > { %p952_p8 = pneg %p951_p5 }
 0x18c   : > { %p958_p9 = por %p957_p7, %p956_p3 }
 0x18e   : > { %p959_p12 = pnand %p958_p9, %p952_p8 }
 0x190   : > { %962 = shalt.err (!%p959_p12)
}
 0x191   : > { %750 = dma.vmem_to_hbm [thread:$0]  (%p1371_p0), %s1281_s20, 128, %s1279_s27, %s508_s14  }
 0x192 PF: > { %s551_s10 = sand.u32 1, %s997_s21   ;;  %p1372_p2 = scmp.ne.s32.totalorder %s1360_s28, 0 }
 0x193   : > { %p1373_p13 = scmp.ge.s32.totalorder %s1009_s24, 2  ;;  %s552_s16 = scalar_lea.sflag [#allocation4], %s551_s10 }
 0x195   : > { %p766_p6 = pnand %p1373_p13, %p1372_p2 }
 0x197   : > { %988 = dma.done.wait (!%p766_p6), %s552_s16, 128  }
 0x198   : > { %990 = vsyncadd (!%p766_p6), %s552_s16, 4294967168  ;;  %s561_s15 = scalar_lea.sflag [#allocation10], %s551_s10 }
 0x199   : > { %992 = dma.done.wait (!%p766_p6), %s561_s15, 128  }
 0x19a   : > { %994 = vsyncadd (!%p766_p6), %s561_s15, 4294967168  ;;  %p24_p0 = scmp.ge.s32.totalorder %s1166_s26, 4   ;;  %s1374_s21 = smov %s1001_s22 }
 0x19b   : > { %s1375_s22 = smov %s1005_s23  ;;  %s1376_s23 = smov %s1182_s11 }
 0x19c   : > { %s1377_s24 = smov %s1166_s26  ;;  %26 = sbr.rel (!%p24_p0) target bundleno = 8 (0x8), region = 110 }
 0x1a3   :  { %566 = vsyncpa [#allocation3], 1 }
 0x1a4   :  { %568 = vsyncpa [#allocation3 + $0x1], 1 }
 0x1a5   :  { %569 = vsyncpa [#allocation6], 1 }
 0x1a6   :  { %570 = vsyncpa [#allocation4], 1 }
 0x1a7   :  { %572 = vsyncpa [#allocation4 + $0x1], 1 }
 0x1a8   :  { %573 = vsyncpa [#allocation10], 1 }
 0x1a9   :  { %575 = vsyncpa [#allocation10 + $0x1], 1 }

</bundles_post_ra>
